<compile_context>
chip_gen: v7x
topology: tpu7x:2x2x1
jax: 0.10.0
libtpu: 0.0.40
codegen_flags: <defaults>
</compile_context>

<pallas_src>
import jax
import jax.numpy as jnp
import numpy as np
from jax.experimental import pallas as pl
from jax.experimental.pallas import tpu as pltpu


# VMEM sizing: keep the pipelined tile footprint v7x-safe (64 MiB per TC) with
# headroom, and raise the scoped limit above v5e/v6e defaults.
_VMEM_LIMIT_BYTES = 60 * 1024 * 1024   # < 64 MiB physical on v7x; >> 16/32 MiB defaults
_TILE_BUDGET_BYTES = 44 * 1024 * 1024  # double-buffered in + out tiles


def _choose_row_tile(rows, lw, H, in_dtype, out_dtype, budget_bytes):
    """Pick the row-tile size TR from the VMEM budget (double-buffered in/out)."""
    in_b = jnp.dtype(in_dtype).itemsize
    out_b = jnp.dtype(out_dtype).itemsize
    # Pallas double-buffers each BlockSpec-managed operand.
    per_row = 2 * (lw * H * in_b + H * out_b)
    tr = budget_bytes // per_row
    # Sublane alignment: multiple of 16 covers f32 (8) and bf16 packing (16).
    tr = (tr // 16) * 16
    tr = max(tr, 16)
    if tr >= rows:
        # Full extent is always a legal block shape (and already tiny).
        return rows
    return tr


def _wlp_kernel(w_ref, x_ref, o_ref):
    # w_ref: SMEM (Lw,) float32 pre-normalized layer weights
    # x_ref: VMEM (Lw, TR, H) hidden-state row tile for all used layers
    # o_ref: VMEM (TR, H) weighted-average output tile
    n_layers = x_ref.shape[0]
    # Lw is small and static -> unrolled scalar-weighted accumulation (VPU),
    # f32 accumulator held in registers; no divide in the epilogue.
    acc = w_ref[0] * x_ref[0].astype(jnp.float32)
    for l in range(1, n_layers):
        acc = acc + w_ref[l] * x_ref[l].astype(jnp.float32)
    o_ref[...] = acc.astype(o_ref.dtype)


def weighted_layer_pooling(all_hidden_states, layer_weights, layer_start=4):
    """all_hidden_states: (L+1, B, S, H); layer_weights: (L+1-layer_start,)."""
    # Glue: static slice of the layer axis (matches all_hidden_states[layer_start:]).
    x = all_hidden_states[layer_start:]
    lw, B, S, H = x.shape
    assert layer_weights.shape == (lw,)

    # Pre-normalize the weights so the kernel is a pure weighted sum.
    w_norm = (layer_weights.astype(jnp.float32)
              / layer_weights.astype(jnp.float32).sum())

    # Flatten (B, S) into one row axis for large, contiguous, lane-dense tiles.
    rows = B * S
    x2 = x.reshape(lw, rows, H)
    out_dtype = all_hidden_states.dtype

    tr = _choose_row_tile(rows, lw, H, x2.dtype, out_dtype, _TILE_BUDGET_BYTES)
    grid = (pl.cdiv(rows, tr),)

    # NOTE: if profiling shows exposed DMA from the lw-way strided input block,
    # pipeline_mode=pl.Buffered(3) on the hidden-states spec (with a smaller TR)
    # is the next lever; default double-buffering is kept here.
    out = pl.pallas_call(
        _wlp_kernel,
        out_shape=jax.ShapeDtypeStruct((rows, H), out_dtype),
        grid_spec=pltpu.PrefetchScalarGridSpec(
            num_scalar_prefetch=0,
            grid=grid,
            in_specs=[
                # layer weights: whole (tiny) vector resident in SMEM
                pl.BlockSpec(memory_space=pltpu.MemorySpace.SMEM),
                # hidden states: all used layers for one row tile per step
                pl.BlockSpec((lw, tr, H), lambda r: (0, r, 0)),
            ],
            out_specs=pl.BlockSpec((tr, H), lambda r: (r, 0)),
        ),
        compiler_params=pltpu.CompilerParams(
            dimension_semantics=("parallel",),  # v7x megacore shards the row grid
            vmem_limit_bytes=_VMEM_LIMIT_BYTES,
        ),
    )(w_norm, x2)

    return out.reshape(B, S, H)


if __name__ == "__main__":
    # Module config (deterministic, in-script).
    num_hidden_layers = 8
    layer_start = 4
    n_used = num_hidden_layers + 1 - layer_start  # = 5

    # Deterministic parameter init: nn.Parameter(torch.tensor([1]*n, dtype=float))
    layer_weights = jnp.ones((n_used,), dtype=jnp.float32)

    # Small example input: (L+1, B, S, H)
    B, S, H = 2, 8, 128
    key = jax.random.PRNGKey(0)
    all_hidden_states = jax.random.normal(
        key, (num_hidden_layers + 1, B, S, H), dtype=jnp.float32
    )

    out = weighted_layer_pooling(all_hidden_states, layer_weights, layer_start)
    out = jax.block_until_ready(out)

    # Pure-JAX reference (mirrors the PyTorch forward exactly).
    emb = all_hidden_states[layer_start:]
    ref = (layer_weights[:, None, None, None] * emb).sum(axis=0) / layer_weights.sum()
    np.testing.assert_allclose(np.asarray(out), np.asarray(ref), rtol=1e-5, atol=1e-5)

    print("KERNEL_OK")
</pallas_src>

<mosaic_0001>
module attributes {stable_mosaic.version = 11 : i64} {
  func.func @_wlp_kernel(%arg0: i32, %arg1: memref<5xf32, #tpu.memory_space<smem>>, %arg2: memref<5x16x128xf32, #tpu.memory_space<vmem>>, %arg3: memref<16x128xf32, #tpu.memory_space<vmem>>) attributes {dimension_semantics = [#tpu.dimension_semantics<parallel>], iteration_bounds = array<i64: 1>, scalar_prefetch = 0 : i64, scratch_operands = 0 : i64, tpu.core_type = #tpu.core_type<tc>, window_params = [{transform_indices = @transform_0, window_bounds = array<i64: 5>}, {transform_indices = @transform_1, window_bounds = array<i64: 5, 16, 128>}, {transform_indices = @transform_2, window_bounds = array<i64: 16, 128>}]} {
    %c0 = arith.constant 0 : index
    %0 = memref.load %arg1[%c0] : memref<5xf32, #tpu.memory_space<smem>>
    %c0_0 = arith.constant 0 : index
    %c0_1 = arith.constant 0 : index
    %c0_2 = arith.constant 0 : index
    %1 = vector.load %arg2[%c0_0, %c0_1, %c0_2] : memref<5x16x128xf32, #tpu.memory_space<vmem>>, vector<1x16x128xf32>
    %2 = vector.shape_cast %1 : vector<1x16x128xf32> to vector<16x128xf32>
    %3 = vector.broadcast %0 : f32 to vector<16x128xf32>
    %4 = arith.mulf %3, %2 : vector<16x128xf32>
    %c1 = arith.constant 1 : index
    %5 = memref.load %arg1[%c1] : memref<5xf32, #tpu.memory_space<smem>>
    %c1_3 = arith.constant 1 : index
    %c0_4 = arith.constant 0 : index
    %c0_5 = arith.constant 0 : index
    %6 = vector.load %arg2[%c1_3, %c0_4, %c0_5] : memref<5x16x128xf32, #tpu.memory_space<vmem>>, vector<1x16x128xf32>
    %7 = vector.shape_cast %6 : vector<1x16x128xf32> to vector<16x128xf32>
    %8 = vector.broadcast %5 : f32 to vector<16x128xf32>
    %9 = arith.mulf %8, %7 : vector<16x128xf32>
    %10 = arith.addf %4, %9 : vector<16x128xf32>
    %c2 = arith.constant 2 : index
    %11 = memref.load %arg1[%c2] : memref<5xf32, #tpu.memory_space<smem>>
    %c2_6 = arith.constant 2 : index
    %c0_7 = arith.constant 0 : index
    %c0_8 = arith.constant 0 : index
    %12 = vector.load %arg2[%c2_6, %c0_7, %c0_8] : memref<5x16x128xf32, #tpu.memory_space<vmem>>, vector<1x16x128xf32>
    %13 = vector.shape_cast %12 : vector<1x16x128xf32> to vector<16x128xf32>
    %14 = vector.broadcast %11 : f32 to vector<16x128xf32>
    %15 = arith.mulf %14, %13 : vector<16x128xf32>
    %16 = arith.addf %10, %15 : vector<16x128xf32>
    %c3 = arith.constant 3 : index
    %17 = memref.load %arg1[%c3] : memref<5xf32, #tpu.memory_space<smem>>
    %c3_9 = arith.constant 3 : index
    %c0_10 = arith.constant 0 : index
    %c0_11 = arith.constant 0 : index
    %18 = vector.load %arg2[%c3_9, %c0_10, %c0_11] : memref<5x16x128xf32, #tpu.memory_space<vmem>>, vector<1x16x128xf32>
    %19 = vector.shape_cast %18 : vector<1x16x128xf32> to vector<16x128xf32>
    %20 = vector.broadcast %17 : f32 to vector<16x128xf32>
    %21 = arith.mulf %20, %19 : vector<16x128xf32>
    %22 = arith.addf %16, %21 : vector<16x128xf32>
    %c4 = arith.constant 4 : index
    %23 = memref.load %arg1[%c4] : memref<5xf32, #tpu.memory_space<smem>>
    %c4_12 = arith.constant 4 : index
    %c0_13 = arith.constant 0 : index
    %c0_14 = arith.constant 0 : index
    %24 = vector.load %arg2[%c4_12, %c0_13, %c0_14] : memref<5x16x128xf32, #tpu.memory_space<vmem>>, vector<1x16x128xf32>
    %25 = vector.shape_cast %24 : vector<1x16x128xf32> to vector<16x128xf32>
    %26 = vector.broadcast %23 : f32 to vector<16x128xf32>
    %27 = arith.mulf %26, %25 : vector<16x128xf32>
    %28 = arith.addf %22, %27 : vector<16x128xf32>
    %c0_15 = arith.constant 0 : index
    %c0_16 = arith.constant 0 : index
    %29 = vector.load %arg3[%c0_15, %c0_16] : memref<16x128xf32, #tpu.memory_space<vmem>>, vector<16x128xf32>
    tpu.vector_store %arg3[%c0_15, %c0_16], %28 {strides = array<i32>} : memref<16x128xf32, #tpu.memory_space<vmem>>, vector<16x128xf32>,
    return
  }
  func.func @transform_0(%arg0: i32) -> i32 {
    %c0_i32 = arith.constant 0 : i32
    %c0_i32_0 = arith.constant 0 : i32
    return %c0_i32 : i32
  }
  func.func @transform_1(%arg0: i32) -> (i32, i32, i32) {
    %c0_i32 = arith.constant 0 : i32
    %c0_i32_0 = arith.constant 0 : i32
    %c0_i32_1 = arith.constant 0 : i32
    return %c0_i32, %arg0, %c0_i32_0 : i32, i32, i32
  }
  func.func @transform_2(%arg0: i32) -> (i32, i32) {
    %c0_i32 = arith.constant 0 : i32
    %c0_i32_0 = arith.constant 0 : i32
    return %arg0, %c0_i32 : i32, i32
  }
}

</mosaic_0001>

<bundles_post_ra>
// kernel: tpu_custom_call.1
= control target key start
LH: loop header
LB: loop body
LE: loop exit
PB: predicated region body
PF: predicated region fallthrough
CT: control target
= control target key end

     0   :  { %7 = vsyncpa [#allocation5], 0  ;;  %s230_s0 = inlined_call_operand.hbm [shape: f32[5], index: 0, kind: input, shape index: {}]   ;;  %s231_s1 = inlined_call_operand.hbm [shape: f32[5,16,128], index: 1, kind: input, shape index: {}]   ;;  %s232_s2 = inlined_call_operand.hbm [shape: f32[16,128], index: 2, kind: output, shape index: {}]  }
   0x1   :  { %8 = vsyncpa [#allocation3], 0 }
   0x2   :  { %9 = vsyncpa [#allocation4], 0  ;;  %s108_s11 = scalar_lea.hbm %s230_s0, 16 }
   0x3   :  { %p109_p0 = scmp.ne.s32.totalorder %s230_s0, %s108_s11  ;;  %p112_p1 = scmp.lt.u32.totalorder %s108_s11, %s230_s0 }
   0x5   :  { %p114_p2 = pnand %p112_p1, %p109_p0 }
   0x7   :  { %117 = shalt.err (!%p114_p2)
}
   0x8   :  { %s168_s16 = smov [#allocation2]   ;;  %s169_s19 = smov [#allocation6]  }
   0x9   :  { %17 = dma.hbm_to_smem %s230_s0, 16, %s168_s16, [#allocation5]  }
   0xa   :  { %s23_s20 = sshll.u32 %s169_s19, 4  ;;  %s118_s23 = scalar_lea.hbm %s231_s1, 1280  ;;  %s24_s20 = int_to_ptr.vmem [resolvable:$true] %s23_s20 }
   0xb   :  { %p119_p3 = scmp.ne.s32.totalorder %s231_s1, %s118_s23  ;;  %p122_p4 = scmp.lt.u32.totalorder %s118_s23, %s231_s1 }
   0xd   :  { %p124_p5 = pnand %p122_p4, %p119_p3 }
   0xf   :  { %127 = shalt.err (!%p124_p5)
}
  0x10   :  { %s128_s28 = scalar_lea.vmem %s24_s20, 1280  ;;  %p133_p7 = scmp.lt.s32.totalorder %s24_s20, %s24_s20 }
  0x11   :  { %p129_p6 = scmp.ne.s32.totalorder %s24_s20, %s128_s28  ;;  %p134_p8 = scmp.lt.s32.totalorder %s128_s28, %s128_s28 }
  0x13   :  { %p135_p9 = por %p134_p8, %p133_p7 }
  0x15   :  { %p136_p10 = pnand %p135_p9, %p129_p6 }
  0x17   :  { %139 = shalt.err (!%p136_p10)
}
  0x18   :  { %s170_s0 = smov 128   ;;  %s171_s29 = smov 8  }
  0x19   :  { %29 = dma.hbm_to_vmem [thread:$0]  %s231_s1, 1280, %s24_s20, [#allocation3], %s170_s0, %s170_s0, %s171_s29  }
  0x1a   :  { %162 = dma.done.wait [#allocation5], 16  }
  0x1b   :  { %163 = vsyncadd [#allocation5], 4294967280 }
  0x1c   :  { %164 = dma.done.wait [#allocation3], 1280  }
  0x1d   :  { %165 = vsyncadd [#allocation3], 4294966016 }
  0x1e   :  { %36 = sfence }
  0x1f   :  { %s37_s4 = sld [smem:[#allocation2]]  ;;  %s99_s5 = sld [smem:[#allocation2 + $0x1]]  ;;  %v38_v0 = vld [vmem:[#allocation6] sm:$0xff]  ;;  %v45_v1 = vld [vmem:[#allocation6 + $0x10] sm:$0xff]  ;;  %v39_v3 = vld [vmem:[#allocation6 + $0x8] sm:$0xff] }
  0x20   :  { %s100_s6 = sld [smem:[#allocation2 + $0x2]]  ;;  %s101_s7 = sld [smem:[#allocation2 + $0x3]]  ;;  %v54_v2 = vld [vmem:[#allocation6 + $0x20] sm:$0xff]  ;;  %v63_v6 = vld [vmem:[#allocation6 + $0x30] sm:$0xff]  ;;  %v46_v7 = vld [vmem:[#allocation6 + $0x18] sm:$0xff] }
  0x21   :  { %s102_s8 = sld [smem:[#allocation2 + $0x4]]  ;;  %v55_v8 = vld [vmem:[#allocation6 + $0x28] sm:$0xff]  ;;  %v72_v14 = vld [vmem:[#allocation6 + $0x40] sm:$0xff]  ;;  %v64_v17 = vld [vmem:[#allocation6 + $0x38] sm:$0xff]  ;;  %s172_s1 = smov [#allocation7]  }
  0x22   :  { %v73_v22 = vld [vmem:[#allocation6 + $0x48] sm:$0xff]  ;;  %s86_s9 = sshll.u32 %s172_s1, 4  ;;  %s87_s9 = int_to_ptr.vmem [resolvable:$true] %s86_s9 }
  0x23   :  { %s140_s10 = scalar_lea.vmem %s87_s9, 256  ;;  %p145_p12 = scmp.lt.s32.totalorder %s87_s9, %s87_s9 }
  0x24   :  { %p141_p11 = scmp.ne.s32.totalorder %s87_s9, %s140_s10  ;;  %p146_p13 = scmp.lt.s32.totalorder %s140_s10, %s140_s10 }
  0x25   :  { %v40_v4 = vstv %s37_s4  ;;  %v47_v5 = vstv %s99_s5 }
  0x26   :  { %v41_v9 = vmul.f32 %v40_v4, %v38_v0  ;;  %v48_v10 = vmul.f32 %v47_v5, %v45_v1  ;;  %v56_v11 = vstv %s100_s6  ;;  %v65_v12 = vstv %s101_s7  ;;  %p147_p0 = por %p146_p13, %p145_p12 }
  0x27   :  { %v57_v13 = vmul.f32 %v56_v11, %v54_v2  ;;  %v74_v15 = vstv %s102_s8  ;;  %v42_v16 = vmul.f32 %v40_v4, %v39_v3  ;;  %v66_v19 = vmul.f32 %v65_v12, %v63_v6 }
  0x28   :  { %v50_v18 = vadd.f32 %v48_v10, %v41_v9  ;;  %v49_v20 = vmul.f32 %v47_v5, %v46_v7  ;;  %v58_v21 = vmul.f32 %v56_v11, %v55_v8  ;;  %v75_v24 = vmul.f32 %v74_v15, %v72_v14  ;;  %p148_p1 = pnand %p147_p0, %p141_p11 }
  0x29   :  { %v67_v26 = vmul.f32 %v65_v12, %v64_v17  ;;  %v76_v29 = vmul.f32 %v74_v15, %v73_v22 }
  0x2a   :  { %v59_v23 = vadd.f32 %v57_v13, %v50_v18  ;;  %v51_v25 = vadd.f32 %v49_v20, %v42_v16 }
  0x2c   :  { %v68_v27 = vadd.f32 %v66_v19, %v59_v23  ;;  %v60_v28 = vadd.f32 %v58_v21, %v51_v25 }
  0x2e   :  { %v77_v30 = vadd.f32 %v75_v24, %v68_v27  ;;  %v69_v31 = vadd.f32 %v67_v26, %v60_v28 }
  0x30   :  { %79 = vst [vmem:[#allocation7] sm:$0xff] %v77_v30  ;;  %v78_v32 = vadd.f32 %v76_v29, %v69_v31 }
  0x32   :  { %80 = vst [vmem:[#allocation7 + $0x8] sm:$0xff] %v78_v32 }
  0x33   :  { %151 = shalt.err (!%p148_p1)
}
  0x34   :  { %s152_s13 = scalar_lea.hbm %s232_s2, 256 }
  0x35   :  { %p153_p2 = scmp.ne.s32.totalorder %s232_s2, %s152_s13  ;;  %p156_p3 = scmp.lt.u32.totalorder %s152_s13, %s232_s2 }
  0x37   :  { %p158_p4 = pnand %p156_p3, %p153_p2 }
  0x39   :  { %161 = shalt.err (!%p158_p4)
}
  0x3a   :  { %92 = dma.vmem_to_hbm [thread:$0]  %s87_s9, 256, %s232_s2, [#allocation4], %s170_s0, %s170_s0, %s171_s29  }
  0x3b   :  { %166 = dma.done.wait [#allocation4], 256  }
  0x3c   :  { %167 = vsyncadd [#allocation4], 4294967040 }
  0x3d   :  { %96 = vsyncpa [#allocation3], 1 }
  0x3e   :  { %97 = vsyncpa [#allocation4], 1 }
  0x3f   :  { %98 = vsyncpa [#allocation5], 1 }

</bundles_post_ra>
